<compile_context>
chip_gen: v7x
topology: tpu7x:2x2x1
jax: 0.10.0
libtpu: 0.0.40
codegen_flags: <defaults>
</compile_context>

<pallas_src>
import jax
import jax.numpy as jnp
from jax.experimental import pallas as pl
from jax.experimental.pallas import tpu as pltpu


def _shuffle_copy_kernel(idx_ref, x_ref, y_ref):
    # The channel gather already happened in the input index_map; just copy.
    del idx_ref
    y_ref[...] = x_ref[...]


def _vmem_budgets():
    """Per-generation (block_budget_bytes, vmem_limit_bytes)."""
    cap = 128 * 1024 * 1024                       # v5e/v6e physical VMEM
    try:
        info = pltpu.get_tpu_info()
        cap = int(getattr(info, "vmem_capacity_bytes", cap)) or cap
    except Exception:
        pass
    # One block per DMA; in+out double-buffered => ~4 blocks live at peak.
    block_budget = cap // 8                       # v7x: 8 MiB, v5e/v6e: 16 MiB
    vmem_limit = min(cap * 3 // 4, block_budget * 6)   # v7x: 48 MiB, else 96 MiB
    return block_budget, vmem_limit


def _pick_tiles(n, rows, itemsize, block_budget):
    """Choose (b_tile, r_tile) so one block fits block_budget bytes, is
    sublane-aligned for the dtype, and is as large as possible."""
    m = max(8, 32 // itemsize)          # sublane multiple: f32->8, bf16->16, int8->32
    lane_row_bytes = 128 * itemsize     # bytes of one (1, 128) row

    # Smallest legal row tile (full extent is always legal when rows < m).
    min_r = rows if rows < m else m

    # Batch tile: keep the whole batch per block unless that alone busts the budget.
    if n * min_r * lane_row_bytes <= block_budget:
        b_tile = n
    else:
        b_tile = max(1, block_budget // (min_r * lane_row_bytes))

    # Row tile: grow to fill the remaining budget.
    r_cap = max(min_r, block_budget // (b_tile * lane_row_bytes))
    if r_cap >= rows:
        r_tile = rows                   # full extent: no boundary masking
    else:
        r_tile = max(min_r, (r_cap // m) * m)
    return b_tile, r_tile


def shuffle_forward(x_nchw, indices):
    """y = x[:, indices]; returns (y, 0). x is NCHW, indices is (C,) int."""
    n, c, h, w = x_nchw.shape
    assert indices.shape == (c,)
    s = h * w
    # TODO(synk): support H*W not divisible by 128 (needs a padded lane tile
    # while keeping the output store 128-lane dense); the model's shapes are ok.
    assert s % 128 == 0, "H*W must be a multiple of 128"
    rows = s // 128
    itemsize = jnp.dtype(x_nchw.dtype).itemsize

    block_budget, vmem_limit = _vmem_budgets()
    b_tile, r_tile = _pick_tiles(n, rows, itemsize, block_budget)
    grid = (c, pl.cdiv(n, b_tile), pl.cdiv(rows, r_tile))

    x4 = x_nchw.reshape(n, c, rows, 128)          # free contiguous reshape
    idx = indices.astype(jnp.int32)

    bytes_accessed = 2 * x4.size * itemsize       # one HBM read + one HBM write
    y4 = pl.pallas_call(
        _shuffle_copy_kernel,
        out_shape=jax.ShapeDtypeStruct((n, c, rows, 128), x_nchw.dtype),
        grid_spec=pltpu.PrefetchScalarGridSpec(
            num_scalar_prefetch=1,
            grid=grid,
            in_specs=[
                # Gather: output channel ci is fed from input channel idx[ci].
                pl.BlockSpec(
                    (b_tile, None, r_tile, 128),
                    lambda ci, bi, ri, idx_ref: (bi, idx_ref[ci], ri, 0),
                ),
            ],
            out_specs=pl.BlockSpec(
                (b_tile, None, r_tile, 128),
                lambda ci, bi, ri, idx_ref: (bi, ci, ri, 0),
            ),
        ),
        compiler_params=pltpu.CompilerParams(
            dimension_semantics=("parallel", "parallel", "parallel"),
            vmem_limit_bytes=int(vmem_limit),
        ),
        cost_estimate=pl.CostEstimate(
            flops=0, transcendentals=0, bytes_accessed=bytes_accessed
        ),
    )(idx, x4)

    y = y4.reshape(n, c, h, w)
    return y, 0


def init_shuffle_params(key, in_channel):
    """Deterministic re-implementation of Shuffle.__init__."""
    indices = jax.random.permutation(key, in_channel).astype(jnp.int32)
    invert_inds = jnp.argsort(indices).astype(jnp.int32)
    return {"indices": indices, "invert_inds": invert_inds}


if __name__ == "__main__":
    key = jax.random.PRNGKey(0)
    k_perm, k_x = jax.random.split(key)

    N, C, H, W = 2, 4, 16, 16
    params = init_shuffle_params(k_perm, C)
    x = jax.random.normal(k_x, (N, C, H, W), dtype=jnp.float32)

    y, extra = shuffle_forward(x, params["indices"])
    jax.block_until_ready(y)

    # Pure-JAX reference: gather along the channel dim.
    y_ref = jnp.take(x, params["indices"], axis=1)
    assert y.shape == (N, C, H, W)
    assert extra == 0
    assert jnp.array_equal(y, y_ref)     # pure copy -> bit-exact

    print("KERNEL_OK")
</pallas_src>

<mosaic_0001>
module attributes {stable_mosaic.version = 11 : i64} {
  func.func @_shuffle_copy_kernel(%arg0: i32, %arg1: i32, %arg2: i32, %arg3: memref<4xi32, #tpu.memory_space<smem>>, %arg4: memref<2x1x2x128xf32, #tpu.memory_space<vmem>>, %arg5: memref<2x1x2x128xf32, #tpu.memory_space<vmem>>) attributes {dimension_semantics = [#tpu.dimension_semantics<parallel>, #tpu.dimension_semantics<parallel>, #tpu.dimension_semantics<parallel>], iteration_bounds = array<i64: 4, 1, 1>, scalar_prefetch = 1 : i64, scratch_operands = 0 : i64, tpu.core_type = #tpu.core_type<tc>, window_params = [{transform_indices = @transform_0, window_bounds = array<i64: 2, 1, 2, 128>}, {transform_indices = @transform_1, window_bounds = array<i64: 2, 1, 2, 128>}]} {
    %c0 = arith.constant 0 : index
    %c0_0 = arith.constant 0 : index
    %c0_1 = arith.constant 0 : index
    %c0_2 = arith.constant 0 : index
    %0 = vector.load %arg4[%c0, %c0_0, %c0_1, %c0_2] : memref<2x1x2x128xf32, #tpu.memory_space<vmem>>, vector<2x1x2x128xf32>
    %1 = vector.shape_cast %0 : vector<2x1x2x128xf32> to vector<2x2x128xf32>
    %c0_3 = arith.constant 0 : index
    %c0_4 = arith.constant 0 : index
    %c0_5 = arith.constant 0 : index
    %c0_6 = arith.constant 0 : index
    %2 = vector.load %arg5[%c0_3, %c0_4, %c0_5, %c0_6] : memref<2x1x2x128xf32, #tpu.memory_space<vmem>>, vector<2x1x2x128xf32>
    %3 = vector.shape_cast %2 : vector<2x1x2x128xf32> to vector<2x2x128xf32>
    %4 = vector.shape_cast %1 : vector<2x2x128xf32> to vector<2x1x2x128xf32>
    tpu.vector_store %arg5[%c0_3, %c0_4, %c0_5, %c0_6], %4 {strides = array<i32>} : memref<2x1x2x128xf32, #tpu.memory_space<vmem>>, vector<2x1x2x128xf32>,
    return
  }
  func.func @transform_0(%arg0: i32, %arg1: i32, %arg2: i32, %arg3: memref<4xi32, #tpu.memory_space<smem>>) -> (i32, i32, i32, i32) {
    %0 = arith.index_cast %arg0 : i32 to index
    %1 = memref.load %arg3[%0] : memref<4xi32, #tpu.memory_space<smem>>
    %c0_i32 = arith.constant 0 : i32
    %c0_i32_0 = arith.constant 0 : i32
    return %arg1, %1, %arg2, %c0_i32 : i32, i32, i32, i32
  }
  func.func @transform_1(%arg0: i32, %arg1: i32, %arg2: i32, %arg3: memref<4xi32, #tpu.memory_space<smem>>) -> (i32, i32, i32, i32) {
    %c0_i32 = arith.constant 0 : i32
    %c0_i32_0 = arith.constant 0 : i32
    return %arg1, %arg0, %arg2, %c0_i32 : i32, i32, i32, i32
  }
}

</mosaic_0001>

<bundles_post_ra>
// kernel: tpu_custom_call.1
= control target key start
LH: loop header
LB: loop body
LE: loop exit
PB: predicated region body
PF: predicated region fallthrough
CT: control target
= control target key end

     0   :  { %s792_s0 = inlined_call_operand.hbm [shape: s32[4], index: 0, kind: input, shape index: {}]   ;;  %s793_s1 = inlined_call_operand.hbm [shape: f32[2,4,2,128], index: 1, kind: input, shape index: {}]   ;;  %s794_s2 = inlined_call_operand.hbm [shape: f32[2,4,2,128], index: 2, kind: output, shape index: {}]  }
   0x1   :  { %s397_s11 = scalar_lea.hbm %s792_s0, 16 }
   0x2   :  { %p398_p0 = scmp.ne.s32.totalorder %s792_s0, %s397_s11  ;;  %p401_p1 = scmp.lt.u32.totalorder %s397_s11, %s792_s0 }
   0x4   :  { %p403_p2 = pnand %p401_p1, %p398_p0 }
   0x6   :  { %406 = shalt.err (!%p403_p2)  }
   0x7   :  { %s547_s16 = smov [#allocation3]  }
   0x8   :  { %8 = dma.hbm_to_smem %s792_s0, 16, %s547_s16, [#allocation2] }
   0x9   :  { %501 = dma.done.wait [#allocation2], 16 }
   0xa   :  { %502 = vsyncadd [#allocation2], 4294967280 }
   0xb   :  { %10 = sfence }
   0xc   :  { %11 = vsyncpa [#allocation5], 0 }
   0xd   :  { %13 = vsyncpa [#allocation5 + $0x1], 0 }
   0xe   :  { %14 = vsyncpa [#allocation6], 0 }
   0xf   :  { %16 = vsyncpa [#allocation6 + $0x1], 0  ;;  %s583_s19 = smov 0   ;;  %s585_s20 = smov 0  }
  0x10   :  { %s587_s21 = smov 0   ;;  %s589_s22 = smov 0  }
  0x11   :  { %s591_s23 = smov 0   ;;  %s593_s24 = smov 0  }
  0x12   :  { %s595_s0 = smov 0   ;;  %s597_s25 = smov 0  }
  0x13   :  { %s599_s26 = smov 0  }
  0x14 LB: > { %s287_s27 = sadd.s32 4294967295, %s545_s26   ;;  %s288_s28 = sadd.s32 4294967294, %s545_s26   ;;  %s545_s26 = sphi %s599_s26, %s22_s26   ;;  %s541_s25 = sphi %s597_s25, %s813_s25   ;;  %s537_s0 = sphi %s595_s0, %s812_s0   ;;  %s533_s24 = sphi %s593_s24, %s811_s24   ;;  %s529_s23 = sphi %s591_s23, %s810_s23   ;;  %s525_s22 = sphi %s589_s22, %s809_s22   ;;  %s521_s21 = sphi %s587_s21, %s808_s21   ;;  %s517_s20 = sphi %s585_s20, %s807_s20   ;;  %s513_s19 = sphi %s583_s19, %s806_s19  }
  0x15   : > { %s41_s29 = sadd.s32 1, %s541_s25  ;;  %s45_s30 = sld [smem:[#allocation3 + %s541_s25]] }
  0x16   : > { %p43_p3 = scmp.ge.s32.totalorder %s41_s29, 4  ;;  %s54_s3 = sadd.s32 1, %s533_s24 }
  0x17   : > { %p61_p4 = scmp.ne.s32.totalorder %s533_s24, %s529_s23  ;;  %p62_p5 = scmp.eq.s32.totalorder %s545_s26, 0 }
  0x18   : > { %s815_s29 = smov (%p43_p3, %s41_s29), 0  ;;  %p67_p7 = scmp.ne.s32.totalorder %s529_s23, %s525_s22 }
  0x19   : > { %p636_p6 = por %p62_p5, %p61_p4  ;;  %s46_s5 = sld [smem:[#allocation3 + %s815_s29]] }
  0x1a   : > { %p68_p8 = scmp.eq.s32.totalorder %s287_s27, 0  ;;  %s78_s6 = ssub.s32 %s541_s25, %s815_s29 }
  0x1b   : > { %s84_s7 = sadd.s32 1, %s521_s21  ;;  %p82_p10 = scmp.eq.s32.totalorder %s78_s6, 0 }
  0x1c   : > { %p645_p9 = por %p68_p8, %p67_p7  ;;  %p94_p11 = scmp.ne.s32.totalorder %s521_s21, %s517_s20 }
  0x1d   : > { %p95_p12 = scmp.eq.s32.totalorder %s287_s27, 3  ;;  %p100_p0 = scmp.ne.s32.totalorder %s517_s20, %s513_s19 }
  0x1e   : > { %s798_s8 = scalar_select %p645_p9, 1, 0 }
  0x1f   : > { %s652_s9 = scalar_select %p82_p10, %s521_s21, %s84_s7  }
  0x20   : > { %p654_p13 = por %p95_p12, %p94_p11  ;;  %s48_s11 = ssub.s32 %s45_s30, %s46_s5 }
  0x21   : > { %p101_p1 = scmp.eq.s32.totalorder %s288_s28, 3  ;;  %p52_p2 = scmp.eq.s32.totalorder %s48_s11, 0 }
  0x22   : > { %s799_s10 = scalar_select %p654_p13, 1, 0 }
  0x23   : > { %p660_p3 = por %p101_p1, %p100_p0  ;;  %p316_p4 = scmp.lt.s32.totalorder %s545_s26, 4 }
  0x24   : > { %s666_s13 = scalar_select %p52_p2, %s533_s24, %s54_s3  }
  0x25   : > { %s800_s12 = scalar_select %p660_p3, 1, 0 }
  0x26   : > { %s121_s14 = sand.u32 1, %s533_s24   ;;  %p671_p5 = pnand %p316_p4, %p636_p6 }
  0x27   : > { %s291_s16 = sshll.u32 %s121_s14, 2  ;;  %p293_p7 = scmp.ge.s32.totalorder %s545_s26, 1 }
  0x28   : > { %s300_s17 = scalar_select %p636_p6, [#allocation3], [#allocation8] }
  0x29   : > { %s301_s18 = scalar_select %p636_p6, %s541_s25, 0 }
  0x2a   : > { %s817_s17 = smov (!%p316_p4, %s300_s17), [#allocation9]  ;;  %s125_s27 = scalar_lea.vmem [#allocation4], %s291_s16 }
  0x2b   : > { %s819_s18 = smov (!%p316_p4, %s301_s18), 0  ;;  %s136_s28 = sshll.u32 %s125_s27, 4  ;;  %s682_s28 = int_to_ptr.vmem [resolvable:$true] %s136_s28 }
  0x2c   : > { %s126_s22 = sld [smem:[%s817_s17 + %s819_s18]]  ;;  %p144_p8 = scmp.lt.s32.totalorder %s545_s26, 5 }
  0x2d   : > { %s693_s7 = scalar_lea.sflag [#allocation5], %s121_s14  ;;  %p409_p11 = pneg %p671_p5 }
  0x2e   : > { %p684_p10 = pnand %p293_p7, %p144_p8  ;;  %s412_s18 = scalar_lea.hbm %s793_s1, 256 }
  0x32   : > { %s292_s3 = sshll.u32 %s126_s22, 5 }
  0x33   : > { %s691_s4 = scalar_lea.hbm %s793_s1, %s292_s3 }
  0x34   : > { %s407_s11 = scalar_lea.hbm %s691_s4, 64  ;;  %p413_p1 = scmp.lt.u32.totalorder %s691_s4, %s793_s1 }
  0x35   : > { %p408_p6 = scmp.ne.s32.totalorder %s691_s4, %s407_s11  ;;  %p414_p2 = scmp.lt.u32.totalorder %s412_s18, %s407_s11 }
  0x36   : > { %p416_p7 = scmp.lt.u32.totalorder %s407_s11, %s691_s4 }
  0x37   : > { %p410_p12 = pnand %p409_p11, %p408_p6  ;;  %p415_p4 = por %p414_p2, %p413_p1 }
  0x39   : > { %p411_p0 = pneg %p410_p12  ;;  %p417_p8 = por %p416_p7, %p415_p4 }
  0x3b   : > { %p418_p3 = pnand %p417_p8, %p411_p0 }
  0x3d   : > { %421 = shalt.err (!%p418_p3)
}
  0x3e   : > { %s422_s14 = scalar_lea.vmem %s682_s28, 64  ;;  %s548_s3 = smov [#allocation4]  }
  0x3f   : > { %p423_p6 = scmp.ne.s32.totalorder %s682_s28, %s422_s14  ;;  %s427_s5 = sshll.u32 %s548_s3, 4  ;;  %s428_s5 = int_to_ptr.vmem [resolvable:$false] %s427_s5 }
  0x40   : > { %s429_s6 = scalar_lea.vmem %s428_s5, 128  ;;  %p430_p9 = scmp.lt.s32.totalorder %s682_s28, %s428_s5 }
  0x41   : > { %p425_p12 = pnand %p423_p6, %p409_p11  ;;  %p431_p1 = scmp.lt.s32.totalorder %s429_s6, %s422_s14 }
  0x43   : > { %p426_p13 = pneg %p425_p12  ;;  %p432_p2 = por %p431_p1, %p430_p9 }
  0x45   : > { %p433_p4 = pnand %p432_p2, %p426_p13 }
  0x47   : > { %436 = shalt.err (!%p433_p4)
}
  0x48   : > { %s549_s11 = smov 128   ;;  %s550_s16 = smov 32  }
  0x49   : > { %s551_s17 = smov 2   ;;  %148 = sbr.rel (%p684_p10) target bundleno = 109 (0x6d), region = 24 }
  0x4a   : > { %311 = dma.hbm_to_vmem [thread:$0]  (!%p671_p5), %s691_s4, 64, %s682_s28, %s693_s7, %s549_s11, %s550_s16, %s551_s17  }
  0x4b   : > { %s150_s18 = sand.u32 (!%p684_p10), 1, %s529_s23   ;;  %p803_p9 = scmp.ne.s32.totalorder (!%p684_p10), %s798_s8, 0 }
  0x4c   : > { %s294_s22 = sshll.u32 (!%p684_p10), %s150_s18, 2  ;;  %s151_s27 = scalar_lea.sflag (!%p684_p10), [#allocation5], %s150_s18 }
  0x4d   : > { %s154_s14 = scalar_lea.vmem (!%p684_p10), [#allocation4], %s294_s22 }
  0x50   : > { %504 = dma.done.wait (%p803_p9), %s151_s27, 64  }
  0x51   : > { %506 = vsyncadd (%p803_p9), %s151_s27, 4294967232  ;;  %s170_s3 = sand.u32 1, %s517_s20   ;;  %s297_s28 = sshll.u32 %s537_s0, 5  ;;  %v176_v0 = vld [vmem:[%s154_s14] sm:$0xf]  }
  0x52   : > { %s295_s15 = sshll.u32 %s170_s3, 2  ;;  %s733_s6 = scalar_lea.hbm %s794_s2, %s297_s28 }
  0x53   : > { %s172_s4 = scalar_lea.vmem [#allocation7], %s295_s15  ;;  %s737_s8 = scalar_lea.sflag [#allocation6], %s170_s3 }
  0x54   : > { %s197_s30 = sshll.u32 %s172_s4, 4  ;;  %178 = vst [vmem:[%s172_s4] sm:$0xf] %v176_v0   ;;  %p804_p3 = scmp.ne.s32.totalorder %s799_s10, 0  ;;  %s735_s30 = int_to_ptr.vmem [resolvable:$true] %s197_s30 }
  0x55   : > { %s437_s11 = scalar_lea.vmem %s735_s30, 64  ;;  %s552_s0 = smov [#allocation7]  }
  0x56   : > { %p438_p13 = scmp.ne.s32.totalorder %s735_s30, %s437_s11  ;;  %s441_s16 = sshll.u32 %s552_s0, 4  ;;  %s442_s16 = int_to_ptr.vmem [resolvable:$false] %s441_s16 }
  0x57   : > { %s443_s17 = scalar_lea.vmem %s442_s16, 128  ;;  %p444_p11 = scmp.lt.s32.totalorder %s735_s30, %s442_s16 }
  0x58   : > { %p439_p5 = pnand %p438_p13, %p804_p3  ;;  %p445_p0 = scmp.lt.s32.totalorder %s443_s17, %s437_s11 }
  0x5a   : > { %p440_p10 = pneg %p439_p5  ;;  %p446_p7 = por %p445_p0, %p444_p11 }
  0x5c   : > { %p447_p8 = pnand %p446_p7, %p440_p10 }
  0x5e   : > { %450 = shalt.err (!%p447_p8)
}
  0x5f   : > { %s451_s18 = scalar_lea.hbm %s733_s6, 64  ;;  %s455_s14 = scalar_lea.hbm %s794_s2, 256 }
  0x60   : > { %p452_p6 = scmp.ne.s32.totalorder %s733_s6, %s451_s18  ;;  %p456_p2 = scmp.lt.u32.totalorder %s733_s6, %s794_s2 }
  0x61   : > { %p457_p4 = scmp.lt.u32.totalorder %s455_s14, %s451_s18  ;;  %p459_p13 = scmp.lt.u32.totalorder %s451_s18, %s733_s6 }
  0x62   : > { %p453_p12 = pnand %p452_p6, %p804_p3 }
  0x63   : > { %p458_p9 = por %p457_p4, %p456_p2 }
  0x64   : > { %p454_p1 = pneg %p453_p12 }
  0x65   : > { %p460_p5 = por %p459_p13, %p458_p9 }
  0x67   : > { %p461_p10 = pnand %p460_p5, %p454_p1 }
  0x69   : > { %464 = shalt.err (!%p461_p10)
}
  0x6a   : > { %s553_s28 = smov 32   ;;  %s554_s4 = smov 128  }
  0x6b   : > { %s555_s7 = smov 2  }
  0x6c   : > { %304 = dma.vmem_to_hbm [thread:$0]  (%p804_p3), %s735_s30, 64, %s733_s6, %s737_s8, %s553_s28, %s554_s4, %s555_s7  }
  0x6d PF: > { %p317_p11 = scmp.ge.s32.totalorder %s545_s26, 2  ;;  %s212_s5 = sand.u32 1, %s513_s19  }
  0x6e   : > { %p805_p0 = scmp.ne.s32.totalorder %s800_s12, 0  ;;  %s213_s11 = scalar_lea.sflag [#allocation6], %s212_s5 }
  0x70   : > { %p313_p7 = pnand %p317_p11, %p805_p0 }
  0x72   : > { %508 = dma.done.wait (!%p313_p7), %s213_s11, 64  }
  0x73   : > { %510 = vsyncadd (!%p313_p7), %s213_s11, 4294967232  ;;  %s22_s26 = sadd.s32 1, %s545_s26   ;;  %s806_s19 = smov %s517_s20 }
  0x74   : > { %p19_p8 = scmp.ge.s32.totalorder %s22_s26, 6   ;;  %s807_s20 = smov %s521_s21 }
  0x75   : > { %s808_s21 = smov %s652_s9  ;;  %s809_s22 = smov %s529_s23 }
  0x76   : > { %s810_s23 = smov %s533_s24  ;;  %s811_s24 = smov %s666_s13 }
  0x77   : > { %s812_s0 = smov %s541_s25  ;;  %s813_s25 = smov %s815_s29 }
  0x78   :  { %21 = sbr.rel (!%p19_p8) target bundleno = 20 (0x14), region = 69 }
  0x7f   :  { %218 = vsyncpa [#allocation5], 1 }
  0x80   :  { %220 = vsyncpa [#allocation5 + $0x1], 1 }
  0x81   :  { %221 = vsyncpa [#allocation6], 1 }
  0x82   :  { %223 = vsyncpa [#allocation6 + $0x1], 1 }

</bundles_post_ra>
